<compile_context>
chip_gen: v5e
topology: v5e:2x2
jax: 0.10.0
libtpu: 0.0.40
codegen_flags: <defaults>
</compile_context>

<pallas_src>
import jax
import jax.numpy as jnp
from jax.experimental import pallas as pl
from jax.experimental.pallas import tpu as pltpu

STATE_SIZE = 9
ACTION_SIZE = 3
CAT_IN = STATE_SIZE + ACTION_SIZE      # 12
BIAS_COL = CAT_IN                      # 12: constant-1 row carries b1 / b2
CAT_PAD = 16                           # pad K to 16 -> exact sublane packing
HIDDEN = 128

# Batch-tile caps (f32 intermediates [256,TB]+2*[128,TB]+[8,TB] ~= 2.1 KB/col):
#  * single-TC (v5e/v6e): TB=4096 -> ~10 MB, well inside the 32 MiB scoped limit.
#  * multi-TC (v7x): TB=2048 per tile so the batch splits across both cores.
MAX_TB_SINGLE_TC = 4096
MAX_TB_MULTI_TC = 2048


def _round_up(x, m):
    return ((x + m - 1) // m) * m


def _num_tensorcores():
    """2 for v7x-class parts (2 TCs/chip), 1 otherwise."""
    try:
        kind = jax.devices()[0].device_kind.lower()
    except Exception:
        return 1
    return 2 if ("v7" in kind or "tpu7" in kind) else 1


def _pick_tiling(batch, n_cores):
    """Choose (batch_tile, padded_batch) for the lane axis."""
    b128 = max(128, _round_up(batch, 128))
    max_tb = MAX_TB_MULTI_TC if n_cores > 1 else MAX_TB_SINGLE_TC
    # Enough tiles to respect the VMEM cap; on multi-TC chips at least 2 tiles
    # per core so the "parallel" axis actually shards.
    n_tiles = max(pl.cdiv(b128, max_tb), 2 * n_cores if n_cores > 1 else 1)
    n_tiles = min(n_tiles, b128 // 128)          # never below the 128-lane minimum
    tb = _round_up(pl.cdiv(b128, n_tiles), 128)
    n_tiles = pl.cdiv(b128, tb)
    return tb, n_tiles * tb


def _critic_kernel(xa_ref, wcat_ref, w2h_ref, wq_ref, bq_ref, out_ref):
    # One MXU pass computes fc1 (+b1) and the action/bias part of fc2 (+b2):
    # [256, 16] @ [16, TB] -> [256, TB]  (block-diagonal weight, bias column).
    z = jnp.dot(wcat_ref[...], xa_ref[...], preferred_element_type=jnp.float32)
    h1 = jnp.maximum(z[:HIDDEN, :], 0.0)          # relu(state@W1 + b1)^T
    act_bias = z[HIDDEN:, :]                      # (action@W2a + b2)^T

    # fc2 on concat(h1, action): [128,128] @ [128,TB] + (action part + b2).
    h2 = jnp.maximum(
        jnp.dot(w2h_ref[...], h1, preferred_element_type=jnp.float32) + act_bias,
        0.0)

    # q head on the MXU: [8,128] @ [128,TB] -> [8,TB]; row 0 = wq^T @ h2.
    qs = jnp.dot(wq_ref[...], h2, preferred_element_type=jnp.float32)
    out_ref[...] = (qs[0:1, :] + bq_ref[...]).astype(out_ref.dtype)


def prepare_params(params):
    """One-time weight packing (hoist out of the per-step call)."""
    w1, b1 = params["w1"], params["b1"]          # [9,128], [128]
    w2, b2 = params["w2"], params["b2"]          # [131,128], [128]
    wq, bq = params["wq"], params["bq"]          # [128,1], [1]

    # Block-diagonal merged weight (transposed) with folded biases:
    #   rows   0:128 : cols 0:9  = W1^T,            col 12 = b1
    #   rows 128:256 : cols 9:12 = W2[action]^T,    col 12 = b2
    wcat = jnp.zeros((2 * HIDDEN, CAT_PAD), jnp.float32)
    wcat = wcat.at[:HIDDEN, :STATE_SIZE].set(w1.T.astype(jnp.float32))
    wcat = wcat.at[:HIDDEN, BIAS_COL].set(b1.astype(jnp.float32))
    wcat = wcat.at[HIDDEN:, STATE_SIZE:CAT_IN].set(w2[HIDDEN:, :].T.astype(jnp.float32))
    wcat = wcat.at[HIDDEN:, BIAS_COL].set(b2.astype(jnp.float32))

    w2h = w2[:HIDDEN, :].T.astype(jnp.float32)                     # [128, 128]
    wq_pad = (jnp.zeros((8, HIDDEN), jnp.float32)                  # [8, 128]
              .at[0, :].set(wq[:, 0].astype(jnp.float32)))
    bq_c = bq.reshape(1, 1).astype(jnp.float32)
    return dict(wcat=wcat, w2h=w2h, wq=wq_pad, bq=bq_c)


def critic_forward(state, action, packed, *, tb=None):
    """state: [B, 9] f32, action: [B, 3] f32, packed = prepare_params(...) -> q: [B, 1]."""
    B = state.shape[0]

    if tb is None:
        tb, b_pad = _pick_tiling(B, _num_tensorcores())
    else:
        tb = max(128, _round_up(int(tb), 128))
        b_pad = _round_up(max(B, tb), tb)

    # Activation stream, already transposed: [state^T; action^T; ones; zeros]
    # -> [16, B] f32 (bias row = 1, K padded to 16 sublanes), then batch pad.
    state_t = state.astype(jnp.float32).T                          # [9, B]
    action_t = action.astype(jnp.float32).T                        # [3, B]
    xa_t = jnp.concatenate(
        [state_t, action_t,
         jnp.ones((1, B), jnp.float32),
         jnp.zeros((CAT_PAD - CAT_IN - 1, B), jnp.float32)], axis=0)
    xa_t = jnp.pad(xa_t, ((0, 0), (0, b_pad - B)))                 # [16, b_pad]

    grid = (b_pad // tb,)
    resident = lambda shape: pl.BlockSpec(shape, lambda i: (0, 0))

    q_row = pl.pallas_call(
        _critic_kernel,
        out_shape=jax.ShapeDtypeStruct((1, b_pad), jnp.float32),
        grid=grid,
        in_specs=[
            pl.BlockSpec((CAT_PAD, tb), lambda i: (0, i)),  # streamed activations
            resident((2 * HIDDEN, CAT_PAD)),                # merged fc1/W2a/bias weight
            resident((HIDDEN, HIDDEN)),                     # fc2 (hidden part)
            resident((8, HIDDEN)),                          # wq (row 0), padded to 8
            resident((1, 1)),                               # bq
        ],
        out_specs=pl.BlockSpec((1, tb), lambda i: (0, i)),  # lane-dense q row
        compiler_params=pltpu.CompilerParams(
            dimension_semantics=("parallel",),              # shards tiles on v7x
            vmem_limit_bytes=32 << 20),
    )(xa_t, packed["wcat"], packed["w2h"], packed["wq"], packed["bq"])

    return q_row[0, :B].reshape(B, 1)


def init_params(key):
    """Deterministic init mimicking PyTorch Linear default (U[-1/sqrt(fan_in), ...])."""
    ks = jax.random.split(key, 6)

    def lin(kw, kb, fan_in, fan_out):
        bound = 1.0 / jnp.sqrt(jnp.float32(fan_in))
        w = jax.random.uniform(kw, (fan_in, fan_out), jnp.float32, -bound, bound)
        b = jax.random.uniform(kb, (fan_out,), jnp.float32, -bound, bound)
        return w, b

    w1, b1 = lin(ks[0], ks[1], STATE_SIZE, HIDDEN)
    w2, b2 = lin(ks[2], ks[3], HIDDEN + ACTION_SIZE, HIDDEN)
    wq, bq = lin(ks[4], ks[5], HIDDEN, 1)
    return dict(w1=w1, b1=b1, w2=w2, b2=b2, wq=wq, bq=bq)


def critic_ref(state, action, params):
    """Pure-JAX reference matching the PyTorch forward exactly."""
    h = jax.nn.relu(state @ params["w1"] + params["b1"])
    x = jnp.concatenate([h, action], axis=-1)
    h2 = jax.nn.relu(x @ params["w2"] + params["b2"])
    return h2 @ params["wq"] + params["bq"]


if __name__ == "__main__":
    key = jax.random.PRNGKey(0)
    kp, ks, ka = jax.random.split(key, 3)

    B = 8
    params = init_params(kp)
    packed = prepare_params(params)          # one-time packing, outside the step
    state = jax.random.normal(ks, (B, STATE_SIZE), jnp.float32)
    action = jax.random.normal(ka, (B, ACTION_SIZE), jnp.float32)

    fwd = jax.jit(critic_forward)
    q = jax.block_until_ready(fwd(state, action, packed))

    q_ref = critic_ref(state, action, params)
    assert q.shape == (B, 1)
    # All data is f32; the only rounding is the MXU's default operand handling
    # (same for kernel and reference) plus bf16 rounding of the folded bias
    # column -> differences are O(1e-3) on O(1) q-values.
    assert jnp.allclose(q, q_ref, atol=1e-2, rtol=1e-2), (
        q, q_ref, jnp.max(jnp.abs(q - q_ref)))

    print("KERNEL_OK")
</pallas_src>

<mosaic_0001>
module attributes {stable_mosaic.version = 11 : i64} {
  func.func @_critic_kernel(%arg0: i32, %arg1: memref<16x128xf32, #tpu.memory_space<vmem>>, %arg2: memref<256x16xf32, #tpu.memory_space<vmem>>, %arg3: memref<128x128xf32, #tpu.memory_space<vmem>>, %arg4: memref<8x128xf32, #tpu.memory_space<vmem>>, %arg5: memref<1x1xf32, #tpu.memory_space<vmem>>, %arg6: memref<1x128xf32, #tpu.memory_space<vmem>>) attributes {dimension_semantics = [#tpu.dimension_semantics<parallel>], iteration_bounds = array<i64: 1>, scalar_prefetch = 0 : i64, scratch_operands = 0 : i64, tpu.core_type = #tpu.core_type<tc>, window_params = [{transform_indices = @transform_0, window_bounds = array<i64: 16, 128>}, {pipeline_mode = #tpu.pipeline_mode<synchronous>, transform_indices = @transform_1, window_bounds = array<i64: 256, 16>}, {pipeline_mode = #tpu.pipeline_mode<synchronous>, transform_indices = @transform_2, window_bounds = array<i64: 128, 128>}, {pipeline_mode = #tpu.pipeline_mode<synchronous>, transform_indices = @transform_3, window_bounds = array<i64: 8, 128>}, {pipeline_mode = #tpu.pipeline_mode<synchronous>, transform_indices = @transform_4, window_bounds = array<i64: 1, 1>}, {transform_indices = @transform_5, window_bounds = array<i64: 1, 128>}]} {
    %c0 = arith.constant 0 : index
    %c0_0 = arith.constant 0 : index
    %0 = vector.load %arg2[%c0, %c0_0] : memref<256x16xf32, #tpu.memory_space<vmem>>, vector<256x16xf32>
    %c0_1 = arith.constant 0 : index
    %c0_2 = arith.constant 0 : index
    %1 = vector.load %arg1[%c0_1, %c0_2] : memref<16x128xf32, #tpu.memory_space<vmem>>, vector<16x128xf32>
    %cst = arith.constant dense<0.000000e+00> : vector<256x128xf32>
    %2 = tpu.matmul %0, %1, %cst {dimension_numbers = #tpu.dot_dimension_numbers<[1], [0], [0], [1], [0, 0, 1, 1], [], []>} : vector<256x16xf32>, vector<16x128xf32>, vector<256x128xf32> -> vector<256x128xf32>
    %3 = vector.extract_strided_slice %2 {offsets = [0, 0], sizes = [128, 128], strides = [1, 1]} : vector<256x128xf32> to vector<128x128xf32>
    %cst_3 = arith.constant 0.000000e+00 : f32
    %4 = vector.broadcast %cst_3 : f32 to vector<128x128xf32>
    %5 = arith.maximumf %3, %4 : vector<128x128xf32>
    %6 = vector.extract_strided_slice %2 {offsets = [128, 0], sizes = [128, 128], strides = [1, 1]} : vector<256x128xf32> to vector<128x128xf32>
    %c0_4 = arith.constant 0 : index
    %c0_5 = arith.constant 0 : index
    %7 = vector.load %arg3[%c0_4, %c0_5] : memref<128x128xf32, #tpu.memory_space<vmem>>, vector<128x128xf32>
    %cst_6 = arith.constant dense<0.000000e+00> : vector<128x128xf32>
    %8 = tpu.matmul %7, %5, %cst_6 {dimension_numbers = #tpu.dot_dimension_numbers<[1], [0], [0], [1], [0, 0, 1, 1], [], []>} : vector<128x128xf32>, vector<128x128xf32>, vector<128x128xf32> -> vector<128x128xf32>
    %9 = arith.addf %8, %6 : vector<128x128xf32>
    %cst_7 = arith.constant 0.000000e+00 : f32
    %10 = vector.broadcast %cst_7 : f32 to vector<128x128xf32>
    %11 = arith.maximumf %9, %10 : vector<128x128xf32>
    %c0_8 = arith.constant 0 : index
    %c0_9 = arith.constant 0 : index
    %12 = vector.load %arg4[%c0_8, %c0_9] : memref<8x128xf32, #tpu.memory_space<vmem>>, vector<8x128xf32>
    %cst_10 = arith.constant dense<0.000000e+00> : vector<8x128xf32>
    %13 = tpu.matmul %12, %11, %cst_10 {dimension_numbers = #tpu.dot_dimension_numbers<[1], [0], [0], [1], [0, 0, 1, 1], [], []>} : vector<8x128xf32>, vector<128x128xf32>, vector<8x128xf32> -> vector<8x128xf32>
    %14 = vector.extract_strided_slice %13 {offsets = [0, 0], sizes = [1, 128], strides = [1, 1]} : vector<8x128xf32> to vector<1x128xf32>
    %c0_11 = arith.constant 0 : index
    %c0_12 = arith.constant 0 : index
    %15 = vector.load %arg5[%c0_11, %c0_12] : memref<1x1xf32, #tpu.memory_space<vmem>>, vector<1x1xf32>
    %16 = vector.broadcast %15 : vector<1x1xf32> to vector<1x128xf32>
    %17 = arith.addf %14, %16 : vector<1x128xf32>
    %c0_13 = arith.constant 0 : index
    %c0_14 = arith.constant 0 : index
    %18 = vector.load %arg6[%c0_13, %c0_14] : memref<1x128xf32, #tpu.memory_space<vmem>>, vector<1x128xf32>
    tpu.vector_store %arg6[%c0_13, %c0_14], %17 {strides = array<i32>} : memref<1x128xf32, #tpu.memory_space<vmem>>, vector<1x128xf32>,
    return
  }
  func.func @transform_0(%arg0: i32) -> (i32, i32) {
    %c0_i32 = arith.constant 0 : i32
    %c0_i32_0 = arith.constant 0 : i32
    return %c0_i32, %arg0 : i32, i32
  }
  func.func @transform_1(%arg0: i32) -> (i32, i32) {
    %c0_i32 = arith.constant 0 : i32
    %c0_i32_0 = arith.constant 0 : i32
    %c0_i32_1 = arith.constant 0 : i32
    return %c0_i32, %c0_i32_0 : i32, i32
  }
  func.func @transform_2(%arg0: i32) -> (i32, i32) {
    %c0_i32 = arith.constant 0 : i32
    %c0_i32_0 = arith.constant 0 : i32
    %c0_i32_1 = arith.constant 0 : i32
    return %c0_i32, %c0_i32_0 : i32, i32
  }
  func.func @transform_3(%arg0: i32) -> (i32, i32) {
    %c0_i32 = arith.constant 0 : i32
    %c0_i32_0 = arith.constant 0 : i32
    %c0_i32_1 = arith.constant 0 : i32
    return %c0_i32, %c0_i32_0 : i32, i32
  }
  func.func @transform_4(%arg0: i32) -> (i32, i32) {
    %c0_i32 = arith.constant 0 : i32
    %c0_i32_0 = arith.constant 0 : i32
    %c0_i32_1 = arith.constant 0 : i32
    return %c0_i32, %c0_i32_0 : i32, i32
  }
  func.func @transform_5(%arg0: i32) -> (i32, i32) {
    %c0_i32 = arith.constant 0 : i32
    %c0_i32_0 = arith.constant 0 : i32
    return %c0_i32, %arg0 : i32, i32
  }
}

</mosaic_0001>

<bundles_post_ra>
// kernel: critic_forward.1
= control target key start
LH: loop header
LB: loop body
LE: loop exit
PB: predicated region body
PF: predicated region fallthrough
CT: control target
= control target key end

     0   :  { %vm56_vm0 = vcmask 130048   ;;  %s725_s0 = inlined_call_operand.vmem [shape: f32[16,128], index: 0, kind: input, shape index: {}]   ;;  %s726_s1 = inlined_call_operand.vmem [shape: f32[256,16], index: 1, kind: input, shape index: {}]   ;;  %s727_s2 = inlined_call_operand.vmem [shape: f32[128,128], index: 2, kind: input, shape index: {}]   ;;  %s728_s4 = inlined_call_operand.<no memory space> [shape: f32[1,1], index: 4, kind: input, shape index: {}]   ;;  %s729_s3 = inlined_call_operand.vmem [shape: f32[8,128], index: 3, kind: input, shape index: {}]   ;;  %s730_s5 = inlined_call_operand.vmem [shape: f32[1,128], index: 5, kind: output, shape index: {}]  }
   0x1   :  { %v55_v0 = vld [vmem:[%s725_s0 + $0x8] sm:$0xff]  ;;  %v54_v1 = vld [vmem:[%s725_s0] sm:$0xff]  ;;  %v24_v4 = vld [vmem:[%s726_s1 + $0x10] sm:$0xff] }
   0x2   :  { %167 = vmatpush.msra.mxu0 %v55_v0  ;;  %v22_v2 = vld [vmem:[%s726_s1] sm:$0xff]  ;;  %445 = vmatpush.msra.mxu2 %v55_v0  ;;  %v23_v3 = vld [vmem:[%s726_s1 + $0x8] sm:$0xff]  ;;  %v25_v5 = vld [vmem:[%s726_s1 + $0x18] sm:$0xff] }
   0x3   :  { %446 = vmatpush.msra.mxu3 %v55_v0  ;;  %v26_v6 = vld [vmem:[%s726_s1 + $0x20] sm:$0xff]  ;;  %v27_v7 = vld [vmem:[%s726_s1 + $0x28] sm:$0xff]  ;;  %v36_v8 = vld [vmem:[%s726_s1 + $0x70] sm:$0xff] }
   0x4   :  { %168 = vmatpush.msra.mxu0 %v54_v1  ;;  %447 = vmatpush.msra.mxu2 %v54_v1  ;;  %v28_v9 = vld [vmem:[%s726_s1 + $0x30] sm:$0xff]  ;;  %v37_v10 = vld [vmem:[%s726_s1 + $0x78] sm:$0xff]  ;;  %v30_v12 = vld [vmem:[%s726_s1 + $0x40] sm:$0xff] }
   0x5   :  { %413 = vmatmul.msk.f32.vlgmr.msra.gmra.mxu0 %vm56_vm0, %v22_v2  ;;  %448 = vmatpush.msra.mxu3 %v54_v1  ;;  %v29_v11 = vld [vmem:[%s726_s1 + $0x38] sm:$0xff]  ;;  %v31_v13 = vld [vmem:[%s726_s1 + $0x48] sm:$0xff]  ;;  %v32_v14 = vld [vmem:[%s726_s1 + $0x50] sm:$0xff] }
   0x6   :  { %427 = vmatmul.msk.f32.vlgmr.msra.gmra.mxu2 %vm56_vm0, %v36_v8  ;;  %v33_v15 = vld [vmem:[%s726_s1 + $0x58] sm:$0xff]  ;;  %v34_v16 = vld [vmem:[%s726_s1 + $0x60] sm:$0xff]  ;;  %v35_v17 = vld [vmem:[%s726_s1 + $0x68] sm:$0xff] }
   0x7   :  { %v40_v22 = vld [vmem:[%s726_s1 + $0x90] sm:$0xff]  ;;  %v41_v24 = vld [vmem:[%s726_s1 + $0x98] sm:$0xff]  ;;  %v42_v26 = vld [vmem:[%s726_s1 + $0xa0] sm:$0xff] }
   0x8   :  { %431 = vmatmul.msk.f32.vlgmr.msra.gmra.mxu3 %vm56_vm0, %v40_v22  ;;  %v43_v29 = vld [vmem:[%s726_s1 + $0xa8] sm:$0xff]  ;;  %v44_v32 = vld [vmem:[%s726_s1 + $0xb0] sm:$0xff]  ;;  %v45_v36 = vld [vmem:[%s726_s1 + $0xb8] sm:$0xff] }
   0x9   :  { %v46_v38 = vld [vmem:[%s726_s1 + $0xc0] sm:$0xff]  ;;  %v47_v41 = vld [vmem:[%s726_s1 + $0xc8] sm:$0xff]  ;;  %v48_v44 = vld [vmem:[%s726_s1 + $0xd0] sm:$0xff] }
   0xa   :  { %v38_v40 = vld [vmem:[%s726_s1 + $0x80] sm:$0xff]  ;;  %v39_v43 = vld [vmem:[%s726_s1 + $0x88] sm:$0xff]  ;;  %v49_v46 = vld [vmem:[%s726_s1 + $0xd8] sm:$0xff] }
   0xb   :  { %v50_v50 = vld [vmem:[%s726_s1 + $0xe0] sm:$0xff]  ;;  %v51_v55 = vld [vmem:[%s726_s1 + $0xe8] sm:$0xff]  ;;  %v52_v60 = vld [vmem:[%s726_s1 + $0xf0] sm:$0xff] }
   0xc   :  { %v282_v1 = vld [vmem:[%s727_s2] sm:$0xff]  ;;  %v293_v2 = vld [vmem:[%s727_s2 + $0x58] sm:$0xff]  ;;  %v292_v22 = vld [vmem:[%s727_s2 + $0x50] sm:$0xff] }
   0xd   :  { %414 = vmatmul.msk.f32.gmra.mxu0 %vm56_vm0, %v23_v3  ;;  %v53_v3 = vld [vmem:[%s726_s1 + $0xf8] sm:$0xff] }
   0xe   :  { %428 = vmatmul.msk.f32.gmra.mxu2 %vm56_vm0, %v37_v10  ;;  %v285_v8 = vld [vmem:[%s727_s2 + $0x18] sm:$0xff]  ;;  %v286_v10 = vld [vmem:[%s727_s2 + $0x20] sm:$0xff] }
  0x10   :  { %432 = vmatmul.msk.f32.gmra.mxu3 %vm56_vm0, %v41_v24 }
  0x15   :  { %415 = vmatmul.msk.f32.gmra.mxu0 %vm56_vm0, %v24_v4  ;;  %v283_v4 = vld [vmem:[%s727_s2 + $0x8] sm:$0xff] }
  0x16   :  { %429 = vmatmul.msk.f32.gmra.mxu2 %vm56_vm0, %v38_v40 }
  0x18   :  { %433 = vmatmul.msk.f32.gmra.mxu3 %vm56_vm0, %v42_v26 }
  0x1d   :  { %416 = vmatmul.msk.f32.gmra.mxu0 %vm56_vm0, %v25_v5  ;;  %v294_v5 = vld [vmem:[%s727_s2 + $0x60] sm:$0xff] }
  0x1e   :  { %430 = vmatmul.msk.f32.gmra.mxu2 %vm56_vm0, %v39_v43 }
  0x20   :  { %434 = vmatmul.msk.f32.gmra.mxu3 %vm56_vm0, %v43_v29 }
  0x25   :  { %417 = vmatmul.msk.f32.gmra.mxu0 %vm56_vm0, %v26_v6  ;;  %v284_v6 = vld [vmem:[%s727_s2 + $0x10] sm:$0xff] }
  0x28   :  { %435 = vmatmul.msk.f32.gmra.mxu3 %vm56_vm0, %v44_v32 }
  0x2d   :  { %418 = vmatmul.msk.f32.gmra.mxu0 %vm56_vm0, %v27_v7  ;;  %v295_v7 = vld [vmem:[%s727_s2 + $0x68] sm:$0xff] }
  0x30   :  { %436 = vmatmul.msk.f32.gmra.mxu3 %vm56_vm0, %v45_v36 }
  0x35   :  { %419 = vmatmul.msk.f32.gmra.mxu0 %vm56_vm0, %v28_v9  ;;  %v296_v9 = vld [vmem:[%s727_s2 + $0x70] sm:$0xff] }
  0x38   :  { %437 = vmatmul.msk.f32.gmra.mxu3 %vm56_vm0, %v46_v38 }
  0x3d   :  { %420 = vmatmul.msk.f32.gmra.mxu0 %vm56_vm0, %v29_v11  ;;  %v297_v11 = vld [vmem:[%s727_s2 + $0x78] sm:$0xff] }
  0x40   :  { %438 = vmatmul.msk.f32.gmra.mxu3 %vm56_vm0, %v47_v41 }
  0x45   :  { %421 = vmatmul.msk.f32.gmra.mxu0 %vm56_vm0, %v30_v12 }
  0x48   :  { %439 = vmatmul.msk.f32.gmra.mxu3 %vm56_vm0, %v48_v44 }
  0x4d   :  { %422 = vmatmul.msk.f32.gmra.mxu0 %vm56_vm0, %v31_v13  ;;  %v287_v13 = vld [vmem:[%s727_s2 + $0x28] sm:$0xff] }
  0x50   :  { %440 = vmatmul.msk.f32.gmra.mxu3 %vm56_vm0, %v49_v46 }
  0x55   :  { %423 = vmatmul.msk.f32.gmra.mxu0 %vm56_vm0, %v32_v14 }
  0x58   :  { %441 = vmatmul.msk.f32.gmra.mxu3 %vm56_vm0, %v50_v50 }
  0x5d   :  { %424 = vmatmul.msk.f32.gmra.mxu0 %vm56_vm0, %v33_v15  ;;  %v288_v15 = vld [vmem:[%s727_s2 + $0x30] sm:$0xff] }
  0x60   :  { %442 = vmatmul.msk.f32.gmra.mxu3 %vm56_vm0, %v51_v55 }
  0x65   :  { %425 = vmatmul.msk.f32.gmra.mxu0 %vm56_vm0, %v34_v16 }
  0x68   :  { %443 = vmatmul.msk.f32.gmra.mxu3 %vm56_vm0, %v52_v60 }
  0x6d   :  { %426 = vmatmul.msk.f32.gmra.mxu0 %vm56_vm0, %v35_v17  ;;  %v289_v17 = vld [vmem:[%s727_s2 + $0x38] sm:$0xff] }
  0x70   :  { %444 = vmatmul.msk.f32.gmra.mxu3 %vm56_vm0, %v53_v3 }
  0x82   :  { %v568_v18 = vpop.f32.mrf.mxu0 }
  0x83   :  { %v266_v0 = vmax.f32 %v568_v18, 0.0  ;;  %v290_v18 = vld [vmem:[%s727_s2 + $0x40] sm:$0xff] }
  0x89   :  { %v212_v28 = vpop.f32.mrf.mxu2 }
  0x8a   :  { %v570_v19 = vpop.f32.mrf.mxu0  ;;  %v280_v33 = vmax.f32 %v212_v28, 0.0 }
  0x8b   :  { %v267_v63 = vmax.f32 %v570_v19, 0.0  ;;  %v680_v12 = vpop.f32.mrf.mxu3 }
  0x91   :  { %v215_v31 = vpop.f32.mrf.mxu2 }
  0x92   :  { %v572_v20 = vpop.f32.mrf.mxu0  ;;  %v281_v34 = vmax.f32 %v215_v31, 0.0 }
  0x93   :  { %v268_v62 = vmax.f32 %v572_v20, 0.0  ;;  %v685_v14 = vpop.f32.mrf.mxu3  ;;  %v291_v20 = vld [vmem:[%s727_s2 + $0x48] sm:$0xff] }
  0x94   :  { %298 = vmatpush.msra.mxu1 %v281_v34  ;;  %449 = vmatpush.msrb.mxu2 %v281_v34 }
  0x96   :  { %299 = vmatpush.msra.mxu1 %v280_v33  ;;  %450 = vmatpush.msrb.mxu2 %v280_v33 }
  0x99   :  { %v218_v26 = vpop.f32.mrf.mxu2 }
  0x9a   :  { %v574_v21 = vpop.f32.mrf.mxu0 }
  0x9b   :  { %v269_v61 = vmax.f32 %v574_v21, 0.0  ;;  %v690_v16 = vpop.f32.mrf.mxu3 }
  0xa1   :  { %v221_v28 = vpop.f32.mrf.mxu2 }
  0xa2   :  { %v580_v23 = vpop.f32.mrf.mxu0 }
  0xa3   :  { %v270_v59 = vmax.f32 %v580_v23, 0.0  ;;  %v698_v19 = vpop.f32.mrf.mxu3 }
  0xaa   :  { %v586_v25 = vpop.f32.mrf.mxu0 }
  0xab   :  { %v271_v58 = vmax.f32 %v586_v25, 0.0  ;;  %v236_v21 = vpop.f32.mrf.mxu3 }
  0xb2   :  { %v188_v27 = vpop.f32.mrf.mxu0 }
  0xb3   :  { %v272_v57 = vmax.f32 %v188_v27, 0.0  ;;  %v239_v23 = vpop.f32.mrf.mxu3 }
  0xba   :  { %v191_v30 = vpop.f32.mrf.mxu0 }
  0xbb   :  { %v273_v56 = vmax.f32 %v191_v30, 0.0  ;;  %v242_v24 = vpop.f32.mrf.mxu3 }
  0xc2   :  { %v194_v35 = vpop.f32.mrf.mxu0 }
  0xc3   :  { %v274_v54 = vmax.f32 %v194_v35, 0.0  ;;  %v245_v25 = vpop.f32.mrf.mxu3 }
  0xca   :  { %v197_v37 = vpop.f32.mrf.mxu0 }
  0xcb   :  { %v275_v53 = vmax.f32 %v197_v37, 0.0  ;;  %v248_v27 = vpop.f32.mrf.mxu3 }
  0xd2   :  { %v200_v39 = vpop.f32.mrf.mxu0 }
  0xd3   :  { %v276_v52 = vmax.f32 %v200_v39, 0.0  ;;  %v251_v29 = vpop.f32.mrf.mxu3 }
  0xda   :  { %v203_v42 = vpop.f32.mrf.mxu0 }
  0xdb   :  { %v277_v51 = vmax.f32 %v203_v42, 0.0  ;;  %v254_v33 = vpop.f32.mrf.mxu3 }
  0xe2   :  { %v206_v45 = vpop.f32.mrf.mxu0 }
  0xe3   :  { %v278_v49 = vmax.f32 %v206_v45, 0.0  ;;  %v257_v38 = vpop.f32.mrf.mxu3 }
  0xea   :  { %v209_v47 = vpop.f32.mrf.mxu0 }
  0xeb   :  { %v279_v48 = vmax.f32 %v209_v47, 0.0  ;;  %v260_v41 = vpop.f32.mrf.mxu3 }
  0xed   :  { %300 = vmatpush.msra.mxu1 %v279_v48  ;;  %451 = vmatpush.msrb.mxu2 %v279_v48 }
  0xef   :  { %301 = vmatpush.msra.mxu1 %v278_v49  ;;  %452 = vmatpush.msrb.mxu2 %v278_v49 }
  0xf1   :  { %302 = vmatpush.msra.mxu1 %v277_v51  ;;  %453 = vmatpush.msrb.mxu2 %v277_v51 }
  0xf3   :  { %303 = vmatpush.msra.mxu1 %v276_v52  ;;  %454 = vmatpush.msrb.mxu2 %v276_v52  ;;  %v263_v44 = vpop.f32.mrf.mxu3 }
  0xf5   :  { %304 = vmatpush.msra.mxu1 %v275_v53  ;;  %455 = vmatpush.msrb.mxu2 %v275_v53 }
  0xf7   :  { %305 = vmatpush.msra.mxu1 %v274_v54  ;;  %456 = vmatpush.msrb.mxu2 %v274_v54 }
  0xf9   :  { %306 = vmatpush.msra.mxu1 %v273_v56  ;;  %457 = vmatpush.msrb.mxu2 %v273_v56 }
  0xfb   :  { %307 = vmatpush.msra.mxu1 %v272_v57  ;;  %458 = vmatpush.msrb.mxu2 %v272_v57 }
  0xfd   :  { %308 = vmatpush.msra.mxu1 %v271_v58  ;;  %459 = vmatpush.msrb.mxu2 %v271_v58 }
  0xff   :  { %309 = vmatpush.msra.mxu1 %v270_v59  ;;  %460 = vmatpush.msrb.mxu2 %v270_v59 }
 0x101   :  { %310 = vmatpush.msra.mxu1 %v269_v61  ;;  %461 = vmatpush.msrb.mxu2 %v269_v61  ;;  %v10_v61 = vstv %s728_s4 }
 0x102   :  { %11 = vst [vmem:[#allocation2] sm:$0x1] %v10_v61 }
 0x103   :  { %311 = vmatpush.msra.mxu1 %v268_v62  ;;  %462 = vmatpush.msrb.mxu2 %v268_v62  ;;  %v467_v62 = vmov 0  }
 0x104   :  { %466 = vset.pattern.permute.xlu0 %v467_v62 }
 0x105   :  { %312 = vmatpush.msra.mxu1 %v267_v63  ;;  %463 = vmatpush.msrb.mxu2 %v267_v63 }
 0x107   :  { %313 = vmatpush.msra.mxu1 %v266_v0  ;;  %464 = vmatpush.msrb.mxu2 %v266_v0 }
 0x108   :  { %314 = vmatmul.f32.vlgmr.msra.gmra.mxu1 %v282_v1  ;;  %347 = vmatmul.f32.vlgmr.msrb.gmra.mxu2 %v293_v2 }
 0x109   :  { %v400_v2 = vld [vmem:[#allocation2] sm:$0x1] }
 0x10a   :  { %403 = vperm.xlu0 %466, %v400_v2  }
 0x110   :  { %317 = vmatmul.f32.gmra.mxu1 %v283_v4  ;;  %350 = vmatmul.f32.gmra.mxu2 %v294_v5 }
 0x118   :  { %320 = vmatmul.f32.gmra.mxu1 %v284_v6  ;;  %353 = vmatmul.f32.gmra.mxu2 %v295_v7 }
 0x120   :  { %323 = vmatmul.f32.gmra.mxu1 %v285_v8  ;;  %356 = vmatmul.f32.gmra.mxu2 %v296_v9 }
 0x128   :  { %326 = vmatmul.f32.gmra.mxu1 %v286_v10  ;;  %359 = vmatmul.f32.gmra.mxu2 %v297_v11 }
 0x130   :  { %329 = vmatmul.f32.gmra.mxu1 %v287_v13 }
 0x138   :  { %332 = vmatmul.f32.gmra.mxu1 %v288_v15 }
 0x140   :  { %335 = vmatmul.f32.gmra.mxu1 %v289_v17 }
 0x148   :  { %338 = vmatmul.f32.gmra.mxu1 %v290_v18 }
 0x150   :  { %341 = vmatmul.f32.gmra.mxu1 %v291_v20 }
 0x158   :  { %344 = vmatmul.f32.gmra.mxu1 %v292_v22 }
 0x185   :  { %v315_v30 = vpop.f32.mrf.mxu1 }
 0x186   :  { %v706_v31 = vadd.f32 %v315_v30, %v218_v26 }
 0x18b   :  { %v348_v32 = vpop.f32.mrf.mxu2 }
 0x18c   :  { %v349_v54 = vadd.f32 %v348_v32, %v251_v29 }
 0x18d   :  { %v318_v34 = vpop.f32.mrf.mxu1 }
 0x18e   :  { %v708_v35 = vadd.f32 %v318_v34, %v221_v28  ;;  %v374_v57 = vmax.f32 %v349_v54, 0.0 }
 0x193   :  { %v351_v36 = vpop.f32.mrf.mxu2 }
 0x194   :  { %v352_v50 = vadd.f32 %v351_v36, %v254_v33 }
 0x195   :  { %v321_v37 = vpop.f32.mrf.mxu1 }
 0x196   :  { %v375_v55 = vmax.f32 %v352_v50, 0.0  ;;  %v322_v18 = vadd.f32 %v321_v37, %v680_v12 }
 0x19b   :  { %v354_v39 = vpop.f32.mrf.mxu2 }
 0x19c   :  { %v355_v47 = vadd.f32 %v354_v39, %v257_v38 }
 0x19d   :  { %v324_v40 = vpop.f32.mrf.mxu1 }
 0x19e   :  { %v376_v53 = vmax.f32 %v355_v47, 0.0  ;;  %v325_v15 = vadd.f32 %v324_v40, %v685_v14  ;;  %v379_v14 = vld [vmem:[%s729_s3] sm:$0xff] }
 0x1a0   :  { %v366_v22 = vmax.f32 %v325_v15, 0.0 }
 0x1a3   :  { %v357_v42 = vpop.f32.mrf.mxu2 }
 0x1a4   :  { %v358_v45 = vadd.f32 %v357_v42, %v260_v41 }
 0x1a5   :  { %v327_v43 = vpop.f32.mrf.mxu1 }
 0x1a6   :  { %v377_v51 = vmax.f32 %v358_v45, 0.0  ;;  %v328_v11 = vadd.f32 %v327_v43, %v690_v16  ;;  %v404_v16 = vpop.permute.xlu0 %403 }
 0x1a7   :  { %v406_v12 = vperm.slane %v404_v16, 0 }
 0x1a8   :  { %v367_v20 = vmax.f32 %v328_v11, 0.0 }
 0x1ab   :  { %v360_v46 = vpop.f32.mrf.mxu2 }
 0x1ac   :  { %v361_v48 = vadd.f32 %v360_v46, %v263_v44 }
 0x1ad   :  { %v330_v49 = vpop.f32.mrf.mxu1 }
 0x1ae   :  { %v378_v52 = vmax.f32 %v361_v48, 0.0  ;;  %v331_v9 = vadd.f32 %v330_v49, %v698_v19  ;;  %v364_v19 = vmax.f32 %v708_v35, 0.0 }
 0x1b0   :  { %380 = vmatpush.msra.mxu2 %v378_v52  ;;  %v368_v17 = vmax.f32 %v331_v9, 0.0 }
 0x1b2   :  { %381 = vmatpush.msra.mxu2 %v377_v51 }
 0x1b4   :  { %382 = vmatpush.msra.mxu2 %v376_v53 }
 0x1b5   :  { %v333_v56 = vpop.f32.mrf.mxu1 }
 0x1b6   :  { %383 = vmatpush.msra.mxu2 %v375_v55  ;;  %v334_v7 = vadd.f32 %v333_v56, %v236_v21  ;;  %v365_v21 = vmax.f32 %v322_v18, 0.0 }
 0x1b8   :  { %384 = vmatpush.msra.mxu2 %v374_v57  ;;  %v369_v13 = vmax.f32 %v334_v7, 0.0 }
 0x1bd   :  { %v336_v58 = vpop.f32.mrf.mxu1 }
 0x1be   :  { %v337_v5 = vadd.f32 %v336_v58, %v239_v23  ;;  %v363_v23 = vmax.f32 %v706_v31, 0.0 }
 0x1c0   :  { %v370_v10 = vmax.f32 %v337_v5, 0.0 }
 0x1c5   :  { %v339_v59 = vpop.f32.mrf.mxu1 }
 0x1c6   :  { %v340_v3 = vadd.f32 %v339_v59, %v242_v24 }
 0x1c8   :  { %v371_v8 = vmax.f32 %v340_v3, 0.0 }
 0x1cd   :  { %v342_v60 = vpop.f32.mrf.mxu1 }
 0x1ce   :  { %v343_v0 = vadd.f32 %v342_v60, %v245_v25 }
 0x1d0   :  { %v372_v6 = vmax.f32 %v343_v0, 0.0 }
 0x1d5   :  { %v345_v63 = vpop.f32.mrf.mxu1 }
 0x1d6   :  { %v346_v1 = vadd.f32 %v345_v63, %v248_v27 }
 0x1d8   :  { %v373_v4 = vmax.f32 %v346_v1, 0.0 }
 0x1da   :  { %385 = vmatpush.msra.mxu2 %v373_v4 }
 0x1dc   :  { %386 = vmatpush.msra.mxu2 %v372_v6 }
 0x1de   :  { %387 = vmatpush.msra.mxu2 %v371_v8 }
 0x1e0   :  { %388 = vmatpush.msra.mxu2 %v370_v10 }
 0x1e2   :  { %389 = vmatpush.msra.mxu2 %v369_v13 }
 0x1e4   :  { %390 = vmatpush.msra.mxu2 %v368_v17 }
 0x1e6   :  { %391 = vmatpush.msra.mxu2 %v367_v20 }
 0x1e8   :  { %392 = vmatpush.msra.mxu2 %v366_v22 }
 0x1ea   :  { %393 = vmatpush.msra.mxu2 %v365_v21 }
 0x1ec   :  { %394 = vmatpush.msra.mxu2 %v364_v19 }
 0x1ee   :  { %395 = vmatpush.msra.mxu2 %v363_v23 }
 0x1ef   :  { %396 = vmatmul.f32.vlgmr.msra.gmra.mxu2 %v379_v14 }
 0x272   :  { %v397_v24 = vpop.f32.mrf.mxu2 }
 0x273   :  { %v407_v25 = vadd.f32 %v406_v12, %v397_v24 }
 0x275   :  { %408 = vst [vmem:[%s730_s5] sm:$0x1] %v407_v25 }

</bundles_post_ra>
